<compile_context>
chip_gen: v5e
topology: v5e:2x2
jax: 0.10.0
libtpu: 0.0.40
codegen_flags: <defaults>
</compile_context>

<pallas_src>
import functools

import jax
import jax.numpy as jnp
from jax.experimental import pallas as pl
from jax.experimental.pallas import tpu as pltpu


def _fire_kernel(shifts, x_ref, mask_ref, ws_ref, bs_ref, w1_ref, b1_ref,
                 w3f_ref, b3_ref, out_ref, stack_ref):
    # Shapes (per grid step, batch dim squeezed):
    #   x_ref:    (Cin, TL)      input, spatial flattened on the lane axis
    #   mask_ref: (9, 1, TL)     per-tap validity mask (f32)
    #   ws_ref:   (Cs, Cin)      squeeze 1x1 weight      (compute dtype)
    #   bs_ref:   (Cs, 1)        squeeze bias            (f32)
    #   w1_ref:   (C1, Cs)       expand1x1 weight        (compute dtype)
    #   b1_ref:   (C1, 1)        expand1x1 bias          (f32)
    #   w3f_ref:  (C3, 9*Cs)     expand3x3 weight, tap-major flattened
    #   b3_ref:   (C3, 1)        expand3x3 bias          (f32)
    #   out_ref:  (C1+C3, TL)
    #   stack_ref:(9*Cs, TL) f32 VMEM scratch holding the 9 masked taps
    cs = ws_ref.shape[0]
    c1 = w1_ref.shape[0]
    cdt = ws_ref.dtype                       # MXU compute dtype (bf16 or f32)

    # --- Squeeze 1x1 + ReLU: computed ONCE per tile (f32 accumulation). -------
    y = jnp.dot(ws_ref[...], x_ref[...], preferred_element_type=jnp.float32)
    y = jnp.maximum(y + bs_ref[...], 0.0)    # (Cs, TL) f32

    # --- Expand1x1 + ReLU on the un-shifted squeeze output. -------------------
    o1 = jnp.dot(w1_ref[...], y.astype(cdt), preferred_element_type=jnp.float32)
    # Note: full-lane-width store; sublane-aligned whenever C1 % 8 == 0
    # (true for standard Fire configs).
    out_ref[:c1, :] = jnp.maximum(o1 + b1_ref[...], 0.0).astype(out_ref.dtype)

    # --- Build the 9 taps of the squeeze output in VMEM: roll (XLU) + mask. ---
    for t, sh in enumerate(shifts):          # static 9-way unroll, no live acc
        if sh == 0:                          # centre tap: no shift, mask == 1
            stack_ref[t * cs:(t + 1) * cs, :] = y
        else:
            stack_ref[t * cs:(t + 1) * cs, :] = (
                pltpu.roll(y, shift=sh, axis=1) * mask_ref[t])

    # --- Expand3x3 + ReLU as ONE big-K (9*Cs) MXU matmul over all taps. -------
    o3 = jnp.dot(w3f_ref[...], stack_ref[...].astype(cdt),
                 preferred_element_type=jnp.float32)
    out_ref[c1:, :] = jnp.maximum(o3 + b3_ref[...], 0.0).astype(out_ref.dtype)


def fire_forward(x, ws, bs, w1, b1, w3, b3, *, dilation=1,
                 compute_dtype=jnp.bfloat16):
    """Fire module forward (bn=False).

    x:  (N, Cin, H, W) f32
    ws: (Cs, Cin), bs: (Cs,)          -- squeeze 1x1
    w1: (C1, Cs), b1: (C1,)           -- expand1x1
    w3: (C3, Cs, 3, 3), b3: (C3,)     -- expand3x3, padding=dilation, dilation=dilation
    Returns (N, C1+C3, H, W). `compute_dtype` sets the MXU input dtype
    (bf16 halves HBM/VMEM traffic on v6e/v7x); accumulation is always f32.
    """
    N, Cin, H, W = x.shape
    Cs = ws.shape[0]
    C1 = w1.shape[0]
    C3 = w3.shape[0]
    Cout = C1 + C3
    d = dilation
    HW = H * W
    HWp = ((HW + 127) // 128) * 128          # lane-pad spatial to a 128 multiple
    cdt = jnp.dtype(compute_dtype)
    isz = cdt.itemsize

    # --- JAX-side layout-only prep (no compute, no im2col blow-up) ------------
    x_flat = x.reshape(N, Cin, HW)
    if HWp != HW:
        x_flat = jnp.pad(x_flat, ((0, 0), (0, 0), (0, HWp - HW)))
    x_flat = x_flat.astype(cdt)

    # Per-tap flat-roll shifts and validity masks.
    hh = jnp.arange(H)
    wwi = jnp.arange(W)
    masks, shifts = [], []
    for kh in range(3):
        for kw in range(3):
            oh = (kh - 1) * d
            ow = (kw - 1) * d
            off = oh * W + ow                      # flat source offset
            shifts.append((-off) % HWp)            # roll so result[p] = y[p+off]
            mh = ((hh + oh >= 0) & (hh + oh < H)).astype(jnp.float32)
            mw = ((wwi + ow >= 0) & (wwi + ow < W)).astype(jnp.float32)
            m = (mh[:, None] * mw[None, :]).reshape(HW)
            if HWp != HW:
                m = jnp.pad(m, (0, HWp - HW))
            masks.append(m)
    mask = jnp.stack(masks, axis=0).reshape(9, 1, HWp)

    # Tap-major flattened expand3x3 weight: column t*Cs + c == w3[:, c, kh, kw].
    w3f = jnp.transpose(w3, (0, 2, 3, 1)).reshape(C3, 9 * Cs).astype(cdt)
    ws_c = ws.astype(cdt)
    w1_c = w1.astype(cdt)
    bs2 = bs.reshape(Cs, 1).astype(jnp.float32)
    b12 = b1.reshape(C1, 1).astype(jnp.float32)
    b32 = b3.reshape(C3, 1).astype(jnp.float32)

    # --- Grid / VMEM budget ----------------------------------------------------
    TL = HWp                                   # roll-based taps need full H*W
    vmem_bytes = (
        2 * (Cin * TL * isz                    # x block (double-buffered)
             + Cout * TL * 4                   # out block
             + 9 * 8 * TL * 4)                 # mask block (sublane-padded)
        + 9 * Cs * TL * 4                      # tap-stack scratch (f32)
        + (Cs * Cin + C1 * Cs + 9 * C3 * Cs) * isz      # weights
        + (Cs + C1 + C3) * 8 * 4)                       # biases (padded)
    budget = 48 * 1024 * 1024                  # < v7x 64 MiB physical VMEM
    assert vmem_bytes <= budget, (
        "Fire tile does not fit the VMEM budget; needs row-tiled halo fallback")
    vmem_limit = int(min(budget, max(2 * vmem_bytes, 16 * 1024 * 1024)))

    cost = pl.CostEstimate(
        flops=2 * N * HWp * (Cs * Cin + C1 * Cs + 9 * C3 * Cs),
        transcendentals=0,
        bytes_accessed=int(N * Cin * HWp * isz          # x read once
                           + N * Cout * HWp * 4         # output write
                           + N * 9 * HWp * 4            # mask per grid step
                           + (Cs * Cin + C1 * Cs + 9 * C3 * Cs) * isz),
    )

    kern = functools.partial(_fire_kernel, tuple(shifts))

    out = pl.pallas_call(
        kern,
        out_shape=jax.ShapeDtypeStruct((N, Cout, HWp), x.dtype),
        grid_spec=pltpu.PrefetchScalarGridSpec(
            num_scalar_prefetch=0,
            grid=(N,),
            in_specs=[
                pl.BlockSpec((None, Cin, TL), lambda n: (n, 0, 0)),
                pl.BlockSpec((9, 1, TL), lambda n: (0, 0, 0)),
                pl.BlockSpec((Cs, Cin), lambda n: (0, 0)),
                pl.BlockSpec((Cs, 1), lambda n: (0, 0)),
                pl.BlockSpec((C1, Cs), lambda n: (0, 0)),
                pl.BlockSpec((C1, 1), lambda n: (0, 0)),
                pl.BlockSpec((C3, 9 * Cs), lambda n: (0, 0)),
                pl.BlockSpec((C3, 1), lambda n: (0, 0)),
            ],
            out_specs=pl.BlockSpec((None, Cout, TL), lambda n: (n, 0, 0)),
            scratch_shapes=[pltpu.VMEM((9 * Cs, TL), jnp.float32)],
        ),
        compiler_params=pltpu.CompilerParams(
            dimension_semantics=("parallel",),
            vmem_limit_bytes=vmem_limit,
        ),
        cost_estimate=cost,
    )(x_flat, mask, ws_c, bs2, w1_c, b12, w3f, b32)

    if HWp != HW:
        out = out[:, :, :HW]
    # Free metadata reshape (already NCHW-ordered): (N, Cout, HW) -> (N, Cout, H, W).
    return out.reshape(N, Cout, H, W)


def _reference(x, ws, bs, w1, b1, w3, b3, dilation):
    # Pure-JAX reference of the Fire forward (sanity check only).
    d = dilation
    y = jnp.einsum("oi,nihw->nohw", ws, x) + bs[None, :, None, None]
    y = jnp.maximum(y, 0.0)
    x1 = jnp.einsum("oi,nihw->nohw", w1, y) + b1[None, :, None, None]
    x1 = jnp.maximum(x1, 0.0)
    x3 = jax.lax.conv_general_dilated(
        y, w3, window_strides=(1, 1), padding=[(d, d), (d, d)],
        rhs_dilation=(d, d), dimension_numbers=("NCHW", "OIHW", "NCHW"))
    x3 = jnp.maximum(x3 + b3[None, :, None, None], 0.0)
    return jnp.concatenate([x1, x3], axis=1)


if __name__ == "__main__":
    key = jax.random.PRNGKey(0)
    ks = jax.random.split(key, 7)

    # Fire(in_channel=4, squeeze_channel=4, expand1x1_channel=8, expand3x3_channel=8)
    N, Cin, H, W = 2, 4, 16, 16
    Cs, C1, C3 = 4, 8, 8
    dilation = 1

    x = jax.random.normal(ks[0], (N, Cin, H, W), dtype=jnp.float32)
    ws = 0.2 * jax.random.normal(ks[1], (Cs, Cin), dtype=jnp.float32)
    bs = 0.1 * jax.random.normal(ks[2], (Cs,), dtype=jnp.float32)
    w1 = 0.2 * jax.random.normal(ks[3], (C1, Cs), dtype=jnp.float32)
    b1 = 0.1 * jax.random.normal(ks[4], (C1,), dtype=jnp.float32)
    w3 = 0.2 * jax.random.normal(ks[5], (C3, Cs, 3, 3), dtype=jnp.float32)
    b3 = 0.1 * jax.random.normal(ks[6], (C3,), dtype=jnp.float32)

    ref = _reference(x, ws, bs, w1, b1, w3, b3, dilation)

    # f32 compute path: tight numerical check against the pure-JAX reference.
    out_f32 = fire_forward(x, ws, bs, w1, b1, w3, b3, dilation=dilation,
                           compute_dtype=jnp.float32)
    out_f32 = jax.block_until_ready(out_f32)
    assert out_f32.shape == (N, C1 + C3, H, W)
    assert jnp.allclose(out_f32, ref, atol=2e-4, rtol=2e-4), \
        float(jnp.max(jnp.abs(out_f32 - ref)))

    # bf16 MXU-input fast path (default): looser sanity check.
    out_bf16 = fire_forward(x, ws, bs, w1, b1, w3, b3, dilation=dilation,
                            compute_dtype=jnp.bfloat16)
    out_bf16 = jax.block_until_ready(out_bf16)
    assert out_bf16.shape == (N, C1 + C3, H, W)
    assert jnp.allclose(out_bf16, ref, atol=1e-1, rtol=5e-2), \
        float(jnp.max(jnp.abs(out_bf16 - ref)))

    print("KERNEL_OK")
</pallas_src>

<mosaic_0001>
module attributes {stable_mosaic.version = 11 : i64} {
  func.func @_fire_kernel(%arg0: i32, %arg1: memref<1x4x256xf32, #tpu.memory_space<vmem>>, %arg2: memref<9x1x256xf32, #tpu.memory_space<vmem>>, %arg3: memref<4x4xf32, #tpu.memory_space<vmem>>, %arg4: memref<4x1xf32, #tpu.memory_space<vmem>>, %arg5: memref<8x4xf32, #tpu.memory_space<vmem>>, %arg6: memref<8x1xf32, #tpu.memory_space<vmem>>, %arg7: memref<8x36xf32, #tpu.memory_space<vmem>>, %arg8: memref<8x1xf32, #tpu.memory_space<vmem>>, %arg9: memref<1x16x256xf32, #tpu.memory_space<vmem>>, %arg10: memref<36x256xf32, #tpu.memory_space<vmem>>) attributes {dimension_semantics = [#tpu.dimension_semantics<parallel>], iteration_bounds = array<i64: 2>, scalar_prefetch = 0 : i64, scratch_operands = 1 : i64, tpu.core_type = #tpu.core_type<tc>, window_params = [{transform_indices = @transform_0, window_bounds = array<i64: 1, 4, 256>}, {pipeline_mode = #tpu.pipeline_mode<synchronous>, transform_indices = @transform_1, window_bounds = array<i64: 9, 1, 256>}, {pipeline_mode = #tpu.pipeline_mode<synchronous>, transform_indices = @transform_2, window_bounds = array<i64: 4, 4>}, {pipeline_mode = #tpu.pipeline_mode<synchronous>, transform_indices = @transform_3, window_bounds = array<i64: 4, 1>}, {pipeline_mode = #tpu.pipeline_mode<synchronous>, transform_indices = @transform_4, window_bounds = array<i64: 8, 4>}, {pipeline_mode = #tpu.pipeline_mode<synchronous>, transform_indices = @transform_5, window_bounds = array<i64: 8, 1>}, {pipeline_mode = #tpu.pipeline_mode<synchronous>, transform_indices = @transform_6, window_bounds = array<i64: 8, 36>}, {pipeline_mode = #tpu.pipeline_mode<synchronous>, transform_indices = @transform_7, window_bounds = array<i64: 8, 1>}, {transform_indices = @transform_8, window_bounds = array<i64: 1, 16, 256>}]} {
    %c0 = arith.constant 0 : index
    %c0_0 = arith.constant 0 : index
    %0 = vector.load %arg3[%c0, %c0_0] : memref<4x4xf32, #tpu.memory_space<vmem>>, vector<4x4xf32>
    %c0_1 = arith.constant 0 : index
    %c0_2 = arith.constant 0 : index
    %c0_3 = arith.constant 0 : index
    %1 = vector.load %arg1[%c0_1, %c0_2, %c0_3] : memref<1x4x256xf32, #tpu.memory_space<vmem>>, vector<1x4x256xf32>
    %2 = vector.shape_cast %1 : vector<1x4x256xf32> to vector<4x256xf32>
    %cst = arith.constant dense<0.000000e+00> : vector<4x256xf32>
    %3 = tpu.matmul %0, %2, %cst {dimension_numbers = #tpu.dot_dimension_numbers<[1], [0], [0], [1], [0, 0, 1, 1], [], []>} : vector<4x4xf32>, vector<4x256xf32>, vector<4x256xf32> -> vector<4x256xf32>
    %c0_4 = arith.constant 0 : index
    %c0_5 = arith.constant 0 : index
    %4 = vector.load %arg4[%c0_4, %c0_5] : memref<4x1xf32, #tpu.memory_space<vmem>>, vector<4x1xf32>
    %5 = vector.broadcast %4 : vector<4x1xf32> to vector<4x256xf32>
    %6 = arith.addf %3, %5 : vector<4x256xf32>
    %cst_6 = arith.constant 0.000000e+00 : f32
    %7 = vector.broadcast %cst_6 : f32 to vector<4x256xf32>
    %8 = arith.maximumf %6, %7 : vector<4x256xf32>
    %c0_7 = arith.constant 0 : index
    %c0_8 = arith.constant 0 : index
    %9 = vector.load %arg5[%c0_7, %c0_8] : memref<8x4xf32, #tpu.memory_space<vmem>>, vector<8x4xf32>
    %cst_9 = arith.constant dense<0.000000e+00> : vector<8x256xf32>
    %10 = tpu.matmul %9, %8, %cst_9 {dimension_numbers = #tpu.dot_dimension_numbers<[1], [0], [0], [1], [0, 0, 1, 1], [], []>} : vector<8x4xf32>, vector<4x256xf32>, vector<8x256xf32> -> vector<8x256xf32>
    %c0_10 = arith.constant 0 : index
    %c0_11 = arith.constant 0 : index
    %11 = vector.load %arg6[%c0_10, %c0_11] : memref<8x1xf32, #tpu.memory_space<vmem>>, vector<8x1xf32>
    %12 = vector.broadcast %11 : vector<8x1xf32> to vector<8x256xf32>
    %13 = arith.addf %10, %12 : vector<8x256xf32>
    %cst_12 = arith.constant 0.000000e+00 : f32
    %14 = vector.broadcast %cst_12 : f32 to vector<8x256xf32>
    %15 = arith.maximumf %13, %14 : vector<8x256xf32>
    %c0_13 = arith.constant 0 : index
    %c0_14 = arith.constant 0 : index
    %c0_15 = arith.constant 0 : index
    %16 = vector.load %arg9[%c0_13, %c0_14, %c0_15] : memref<1x16x256xf32, #tpu.memory_space<vmem>>, vector<1x8x256xf32>
    %17 = vector.shape_cast %16 : vector<1x8x256xf32> to vector<8x256xf32>
    %18 = vector.shape_cast %15 : vector<8x256xf32> to vector<1x8x256xf32>
    tpu.vector_store %arg9[%c0_13, %c0_14, %c0_15], %18 {strides = array<i32>} : memref<1x16x256xf32, #tpu.memory_space<vmem>>, vector<1x8x256xf32>,
    %c17_i32 = arith.constant 17 : i32
    %19 = tpu.dynamic_rotate %8 by %c17_i32 dim 1 : vector<4x256xf32>, i32 -> vector<4x256xf32>
    %c0_16 = arith.constant 0 : index
    %c0_17 = arith.constant 0 : index
    %c0_18 = arith.constant 0 : index
    %20 = vector.load %arg2[%c0_16, %c0_17, %c0_18] : memref<9x1x256xf32, #tpu.memory_space<vmem>>, vector<1x1x256xf32>
    %21 = vector.shape_cast %20 : vector<1x1x256xf32> to vector<1x256xf32>
    %22 = vector.broadcast %21 : vector<1x256xf32> to vector<4x256xf32>
    %23 = arith.mulf %19, %22 : vector<4x256xf32>
    %c0_19 = arith.constant 0 : index
    %c0_20 = arith.constant 0 : index
    %24 = vector.load %arg10[%c0_19, %c0_20] : memref<36x256xf32, #tpu.memory_space<vmem>>, vector<4x256xf32>
    tpu.vector_store %arg10[%c0_19, %c0_20], %23 {strides = array<i32>} : memref<36x256xf32, #tpu.memory_space<vmem>>, vector<4x256xf32>,
    %c16_i32 = arith.constant 16 : i32
    %25 = tpu.dynamic_rotate %8 by %c16_i32 dim 1 : vector<4x256xf32>, i32 -> vector<4x256xf32>
    %c1 = arith.constant 1 : index
    %c0_21 = arith.constant 0 : index
    %c0_22 = arith.constant 0 : index
    %26 = vector.load %arg2[%c1, %c0_21, %c0_22] : memref<9x1x256xf32, #tpu.memory_space<vmem>>, vector<1x1x256xf32>
    %27 = vector.shape_cast %26 : vector<1x1x256xf32> to vector<1x256xf32>
    %28 = vector.broadcast %27 : vector<1x256xf32> to vector<4x256xf32>
    %29 = arith.mulf %25, %28 : vector<4x256xf32>
    %c4 = arith.constant 4 : index
    %c0_23 = arith.constant 0 : index
    %30 = vector.load %arg10[%c4, %c0_23] : memref<36x256xf32, #tpu.memory_space<vmem>>, vector<4x256xf32>
    tpu.vector_store %arg10[%c4, %c0_23], %29 {strides = array<i32>} : memref<36x256xf32, #tpu.memory_space<vmem>>, vector<4x256xf32>,
    %c15_i32 = arith.constant 15 : i32
    %31 = tpu.dynamic_rotate %8 by %c15_i32 dim 1 : vector<4x256xf32>, i32 -> vector<4x256xf32>
    %c2 = arith.constant 2 : index
    %c0_24 = arith.constant 0 : index
    %c0_25 = arith.constant 0 : index
    %32 = vector.load %arg2[%c2, %c0_24, %c0_25] : memref<9x1x256xf32, #tpu.memory_space<vmem>>, vector<1x1x256xf32>
    %33 = vector.shape_cast %32 : vector<1x1x256xf32> to vector<1x256xf32>
    %34 = vector.broadcast %33 : vector<1x256xf32> to vector<4x256xf32>
    %35 = arith.mulf %31, %34 : vector<4x256xf32>
    %c8 = arith.constant 8 : index
    %c0_26 = arith.constant 0 : index
    %36 = vector.load %arg10[%c8, %c0_26] : memref<36x256xf32, #tpu.memory_space<vmem>>, vector<4x256xf32>
    tpu.vector_store %arg10[%c8, %c0_26], %35 {strides = array<i32>} : memref<36x256xf32, #tpu.memory_space<vmem>>, vector<4x256xf32>,
    %c1_i32 = arith.constant 1 : i32
    %37 = tpu.dynamic_rotate %8 by %c1_i32 dim 1 : vector<4x256xf32>, i32 -> vector<4x256xf32>
    %c3 = arith.constant 3 : index
    %c0_27 = arith.constant 0 : index
    %c0_28 = arith.constant 0 : index
    %38 = vector.load %arg2[%c3, %c0_27, %c0_28] : memref<9x1x256xf32, #tpu.memory_space<vmem>>, vector<1x1x256xf32>
    %39 = vector.shape_cast %38 : vector<1x1x256xf32> to vector<1x256xf32>
    %40 = vector.broadcast %39 : vector<1x256xf32> to vector<4x256xf32>
    %41 = arith.mulf %37, %40 : vector<4x256xf32>
    %c12 = arith.constant 12 : index
    %c0_29 = arith.constant 0 : index
    %42 = vector.load %arg10[%c12, %c0_29] : memref<36x256xf32, #tpu.memory_space<vmem>>, vector<4x256xf32>
    tpu.vector_store %arg10[%c12, %c0_29], %41 {strides = array<i32>} : memref<36x256xf32, #tpu.memory_space<vmem>>, vector<4x256xf32>,
    %c16 = arith.constant 16 : index
    %c0_30 = arith.constant 0 : index
    %43 = vector.load %arg10[%c16, %c0_30] : memref<36x256xf32, #tpu.memory_space<vmem>>, vector<4x256xf32>
    tpu.vector_store %arg10[%c16, %c0_30], %8 {strides = array<i32>} : memref<36x256xf32, #tpu.memory_space<vmem>>, vector<4x256xf32>,
    %c255_i32 = arith.constant 255 : i32
    %44 = tpu.dynamic_rotate %8 by %c255_i32 dim 1 : vector<4x256xf32>, i32 -> vector<4x256xf32>
    %c5 = arith.constant 5 : index
    %c0_31 = arith.constant 0 : index
    %c0_32 = arith.constant 0 : index
    %45 = vector.load %arg2[%c5, %c0_31, %c0_32] : memref<9x1x256xf32, #tpu.memory_space<vmem>>, vector<1x1x256xf32>
    %46 = vector.shape_cast %45 : vector<1x1x256xf32> to vector<1x256xf32>
    %47 = vector.broadcast %46 : vector<1x256xf32> to vector<4x256xf32>
    %48 = arith.mulf %44, %47 : vector<4x256xf32>
    %c20 = arith.constant 20 : index
    %c0_33 = arith.constant 0 : index
    %49 = vector.load %arg10[%c20, %c0_33] : memref<36x256xf32, #tpu.memory_space<vmem>>, vector<4x256xf32>
    tpu.vector_store %arg10[%c20, %c0_33], %48 {strides = array<i32>} : memref<36x256xf32, #tpu.memory_space<vmem>>, vector<4x256xf32>,
    %c241_i32 = arith.constant 241 : i32
    %50 = tpu.dynamic_rotate %8 by %c241_i32 dim 1 : vector<4x256xf32>, i32 -> vector<4x256xf32>
    %c6 = arith.constant 6 : index
    %c0_34 = arith.constant 0 : index
    %c0_35 = arith.constant 0 : index
    %51 = vector.load %arg2[%c6, %c0_34, %c0_35] : memref<9x1x256xf32, #tpu.memory_space<vmem>>, vector<1x1x256xf32>
    %52 = vector.shape_cast %51 : vector<1x1x256xf32> to vector<1x256xf32>
    %53 = vector.broadcast %52 : vector<1x256xf32> to vector<4x256xf32>
    %54 = arith.mulf %50, %53 : vector<4x256xf32>
    %c24 = arith.constant 24 : index
    %c0_36 = arith.constant 0 : index
    %55 = vector.load %arg10[%c24, %c0_36] : memref<36x256xf32, #tpu.memory_space<vmem>>, vector<4x256xf32>
    tpu.vector_store %arg10[%c24, %c0_36], %54 {strides = array<i32>} : memref<36x256xf32, #tpu.memory_space<vmem>>, vector<4x256xf32>,
    %c240_i32 = arith.constant 240 : i32
    %56 = tpu.dynamic_rotate %8 by %c240_i32 dim 1 : vector<4x256xf32>, i32 -> vector<4x256xf32>
    %c7 = arith.constant 7 : index
    %c0_37 = arith.constant 0 : index
    %c0_38 = arith.constant 0 : index
    %57 = vector.load %arg2[%c7, %c0_37, %c0_38] : memref<9x1x256xf32, #tpu.memory_space<vmem>>, vector<1x1x256xf32>
    %58 = vector.shape_cast %57 : vector<1x1x256xf32> to vector<1x256xf32>
    %59 = vector.broadcast %58 : vector<1x256xf32> to vector<4x256xf32>
    %60 = arith.mulf %56, %59 : vector<4x256xf32>
    %c28 = arith.constant 28 : index
    %c0_39 = arith.constant 0 : index
    %61 = vector.load %arg10[%c28, %c0_39] : memref<36x256xf32, #tpu.memory_space<vmem>>, vector<4x256xf32>
    tpu.vector_store %arg10[%c28, %c0_39], %60 {strides = array<i32>} : memref<36x256xf32, #tpu.memory_space<vmem>>, vector<4x256xf32>,
    %c239_i32 = arith.constant 239 : i32
    %62 = tpu.dynamic_rotate %8 by %c239_i32 dim 1 : vector<4x256xf32>, i32 -> vector<4x256xf32>
    %c8_40 = arith.constant 8 : index
    %c0_41 = arith.constant 0 : index
    %c0_42 = arith.constant 0 : index
    %63 = vector.load %arg2[%c8_40, %c0_41, %c0_42] : memref<9x1x256xf32, #tpu.memory_space<vmem>>, vector<1x1x256xf32>
    %64 = vector.shape_cast %63 : vector<1x1x256xf32> to vector<1x256xf32>
    %65 = vector.broadcast %64 : vector<1x256xf32> to vector<4x256xf32>
    %66 = arith.mulf %62, %65 : vector<4x256xf32>
    %c32 = arith.constant 32 : index
    %c0_43 = arith.constant 0 : index
    %67 = vector.load %arg10[%c32, %c0_43] : memref<36x256xf32, #tpu.memory_space<vmem>>, vector<4x256xf32>
    tpu.vector_store %arg10[%c32, %c0_43], %66 {strides = array<i32>} : memref<36x256xf32, #tpu.memory_space<vmem>>, vector<4x256xf32>,
    %c0_44 = arith.constant 0 : index
    %c0_45 = arith.constant 0 : index
    %68 = vector.load %arg7[%c0_44, %c0_45] : memref<8x36xf32, #tpu.memory_space<vmem>>, vector<8x36xf32>
    %c0_46 = arith.constant 0 : index
    %c0_47 = arith.constant 0 : index
    %69 = vector.load %arg10[%c0_46, %c0_47] : memref<36x256xf32, #tpu.memory_space<vmem>>, vector<36x256xf32>
    %cst_48 = arith.constant dense<0.000000e+00> : vector<8x256xf32>
    %70 = tpu.matmul %68, %69, %cst_48 {dimension_numbers = #tpu.dot_dimension_numbers<[1], [0], [0], [1], [0, 0, 1, 1], [], []>} : vector<8x36xf32>, vector<36x256xf32>, vector<8x256xf32> -> vector<8x256xf32>
    %c0_49 = arith.constant 0 : index
    %c0_50 = arith.constant 0 : index
    %71 = vector.load %arg8[%c0_49, %c0_50] : memref<8x1xf32, #tpu.memory_space<vmem>>, vector<8x1xf32>
    %72 = vector.broadcast %71 : vector<8x1xf32> to vector<8x256xf32>
    %73 = arith.addf %70, %72 : vector<8x256xf32>
    %cst_51 = arith.constant 0.000000e+00 : f32
    %74 = vector.broadcast %cst_51 : f32 to vector<8x256xf32>
    %75 = arith.maximumf %73, %74 : vector<8x256xf32>
    %c0_52 = arith.constant 0 : index
    %c8_53 = arith.constant 8 : index
    %c0_54 = arith.constant 0 : index
    %76 = vector.load %arg9[%c0_52, %c8_53, %c0_54] : memref<1x16x256xf32, #tpu.memory_space<vmem>>, vector<1x8x256xf32>
    %77 = vector.shape_cast %76 : vector<1x8x256xf32> to vector<8x256xf32>
    %78 = vector.shape_cast %75 : vector<8x256xf32> to vector<1x8x256xf32>
    tpu.vector_store %arg9[%c0_52, %c8_53, %c0_54], %78 {strides = array<i32>} : memref<1x16x256xf32, #tpu.memory_space<vmem>>, vector<1x8x256xf32>,
    return
  }
  func.func @transform_0(%arg0: i32) -> (i32, i32, i32) {
    %c0_i32 = arith.constant 0 : i32
    %c0_i32_0 = arith.constant 0 : i32
    %c0_i32_1 = arith.constant 0 : i32
    return %arg0, %c0_i32, %c0_i32_0 : i32, i32, i32
  }
  func.func @transform_1(%arg0: i32) -> (i32, i32, i32) {
    %c0_i32 = arith.constant 0 : i32
    %c0_i32_0 = arith.constant 0 : i32
    %c0_i32_1 = arith.constant 0 : i32
    %c0_i32_2 = arith.constant 0 : i32
    return %c0_i32, %c0_i32_0, %c0_i32_1 : i32, i32, i32
  }
  func.func @transform_2(%arg0: i32) -> (i32, i32) {
    %c0_i32 = arith.constant 0 : i32
    %c0_i32_0 = arith.constant 0 : i32
    %c0_i32_1 = arith.constant 0 : i32
    return %c0_i32, %c0_i32_0 : i32, i32
  }
  func.func @transform_3(%arg0: i32) -> (i32, i32) {
    %c0_i32 = arith.constant 0 : i32
    %c0_i32_0 = arith.constant 0 : i32
    %c0_i32_1 = arith.constant 0 : i32
    return %c0_i32, %c0_i32_0 : i32, i32
  }
  func.func @transform_4(%arg0: i32) -> (i32, i32) {
    %c0_i32 = arith.constant 0 : i32
    %c0_i32_0 = arith.constant 0 : i32
    %c0_i32_1 = arith.constant 0 : i32
    return %c0_i32, %c0_i32_0 : i32, i32
  }
  func.func @transform_5(%arg0: i32) -> (i32, i32) {
    %c0_i32 = arith.constant 0 : i32
    %c0_i32_0 = arith.constant 0 : i32
    %c0_i32_1 = arith.constant 0 : i32
    return %c0_i32, %c0_i32_0 : i32, i32
  }
  func.func @transform_6(%arg0: i32) -> (i32, i32) {
    %c0_i32 = arith.constant 0 : i32
    %c0_i32_0 = arith.constant 0 : i32
    %c0_i32_1 = arith.constant 0 : i32
    return %c0_i32, %c0_i32_0 : i32, i32
  }
  func.func @transform_7(%arg0: i32) -> (i32, i32) {
    %c0_i32 = arith.constant 0 : i32
    %c0_i32_0 = arith.constant 0 : i32
    %c0_i32_1 = arith.constant 0 : i32
    return %c0_i32, %c0_i32_0 : i32, i32
  }
  func.func @transform_8(%arg0: i32) -> (i32, i32, i32) {
    %c0_i32 = arith.constant 0 : i32
    %c0_i32_0 = arith.constant 0 : i32
    %c0_i32_1 = arith.constant 0 : i32
    return %arg0, %c0_i32, %c0_i32_0 : i32, i32, i32
  }
}

</mosaic_0001>

<bundles_post_ra>
// kernel: tpu_custom_call.1
= control target key start
LH: loop header
LB: loop body
LE: loop exit
PB: predicated region body
PF: predicated region fallthrough
CT: control target
= control target key end

     0   :  { %13 = vsyncpa [#allocation4], 0  ;;  %s1266_s0 = inlined_call_operand.vmem [shape: f32[2,4,256], index: 0, kind: input, shape index: {}]   ;;  %s1267_s1 = inlined_call_operand.vmem [shape: f32[9,1,256], index: 1, kind: input, shape index: {}]   ;;  %s1268_s2 = inlined_call_operand.hbm [shape: f32[4,4], index: 2, kind: input, shape index: {}]   ;;  %s1269_s3 = inlined_call_operand.vmem [shape: f32[4,1], index: 3, kind: input, shape index: {}]   ;;  %s1270_s4 = inlined_call_operand.vmem [shape: f32[8,4], index: 4, kind: input, shape index: {}]   ;;  %s1271_s5 = inlined_call_operand.vmem [shape: f32[8,1], index: 5, kind: input, shape index: {}]   ;;  %s1272_s6 = inlined_call_operand.hbm [shape: f32[8,36], index: 6, kind: input, shape index: {}]   ;;  %s1273_s7 = inlined_call_operand.vmem [shape: f32[8,1], index: 7, kind: input, shape index: {}]   ;;  %s1274_s8 = inlined_call_operand.hbm [shape: f32[2,16,256], index: 8, kind: output, shape index: {}]  }
   0x1   :  { %14 = vsyncpa [#allocation7], 0 }
   0x2   :  { %15 = vsyncpa [#allocation5], 0 }
   0x3   :  { %17 = vsyncpa [#allocation5 + $0x1], 0  ;;  %s1097_s27 = smov 0   ;;  %s1099_s28 = smov 0  }
   0x4   :  { %s1101_s29 = smov 0   ;;  %s1103_s30 = smov 0  }
   0x5 LB: > { %s1118_s9 = sadd.s32 4294967295, %s1038_s30   ;;  %s799_s10 = sadd.s32 4294967294, %s1038_s30   ;;  %s1038_s30 = sphi %s1103_s30, %s1281_s30   ;;  %s1034_s29 = sphi %s1101_s29, %s1280_s29   ;;  %s1030_s28 = sphi %s1099_s28, %s1279_s28   ;;  %s1026_s27 = sphi %s1097_s27, %s1278_s27  }
   0x6   : > { %s1122_s11 = sadd.s32 1, %s1038_s30   ;;  %s203_s12 = sadd.s32 1, %s1034_s29 }
   0x7   : > { %s200_s13 = ssub.s32 %s1038_s30, %s1122_s11  ;;  %p213_p0 = scmp.ne.s32.totalorder %s1034_s29, %s1030_s28 }
   0x8   : > { %p201_p1 = scmp.eq.s32.totalorder %s200_s13, 0  ;;  %p214_p2 = scmp.eq.s32.totalorder %s1118_s9, 1 }
   0x9   : > { %p219_p3 = scmp.ne.s32.totalorder %s1030_s28, %s1026_s27  ;;  %p220_p4 = scmp.eq.s32.totalorder %s799_s10, 1 }
   0xa   : > { %s1133_s14 = scalar_select %p201_p1, %s1034_s29, %s203_s12  }
   0xb   : > { %p1135_p5 = por %p214_p2, %p213_p0  ;;  %p1139_p6 = por %p220_p4, %p219_p3 }
   0xc   : > { %p800_p7 = scmp.ge.s32.totalorder %s1038_s30, 1  ;;  %p227_p8 = scmp.lt.s32.totalorder %s1038_s30, 3 }
   0xd   : > { %p857_p9 = scmp.eq.s32.totalorder %s1118_s9, 0  ;;  %s242_s20 = sshll.u32 %s1268_s2, 4  ;;  %s243_s20 = int_to_ptr.hbm [resolvable:$true] %s242_s20 }
   0xe   : > { %p1146_p10 = pnand %p800_p7, %p227_p8  ;;  %s1040_s21 = smov [#allocation3]  }
   0xf   : > { %s244_s22 = sshll.u32 %s1040_s21, 4  ;;  %s263_s25 = sshll.u32 %s1272_s6, 4  ;;  %s245_s22 = int_to_ptr.vmem [resolvable:$true] %s244_s22  ;;  %s264_s25 = int_to_ptr.hbm [resolvable:$true] %s263_s25 }
  0x10   : > { %p846_p11 = pneg %p1146_p10  ;;  %s1041_s26 = smov [#allocation6]  }
  0x11   : > { %s265_s10 = sshll.u32 %s1041_s26, 4  ;;  %289 = sbr.rel (%p1146_p10) target bundleno = 479 (0x1df), region = 52  ;;  %s266_s10 = int_to_ptr.vmem [resolvable:$true] %s265_s10 }
  0x12   : > { %p847_p12 = pnand %p857_p9, %p846_p11 }
  0x14   : > { %849 = dma.hbm_to_vmem [thread:$0]  (!%p847_p12), %s243_s20, 64, %s245_s22, [#allocation4]  }
  0x15   : > { %852 = dma.hbm_to_vmem [thread:$0]  (!%p847_p12), %s264_s25, 128, %s266_s10, [#allocation7]  }
  0x16   : > { %1013 = dma.done.wait (%p857_p9), [#allocation4], 64  }
  0x17   : > { %1015 = vsyncadd (%p857_p9), [#allocation4], 4294967232 }
  0x18   : > { %1017 = dma.done.wait (%p857_p9), [#allocation7], 128  }
  0x19   : > { %1019 = vsyncadd (%p857_p9), [#allocation7], 4294967168  ;;  %p329_p13 = scmp.lt.s32.totalorder %s1118_s9, 1  ;;  %v1042_v0 = vmov 0   ;;  %v336_v2 = vld [vmem:[%s1269_s3] sm:$0xf]  ;;  %v461_v14 = vlaneseq }
  0x1a   : > { %906 = vset.pattern.permute.xlu0 %v1042_v0  ;;  %907 = vset.pattern.permute.xlu2 %v1042_v0  ;;  %vm350_vm0 = vcmask 1043456   ;;  %v334_v3 = vld [vmem:[#allocation3] sm:$0xf]  ;;  %vm346_vm1 = vcmask 31744   ;;  %s1043_s22 = smov 111   ;;  %s1044_s23 = smov 112  }
  0x1b   : > { %s330_s12 = scalar_select %p329_p13, %s1118_s9, 1  ;;  %339 = vperm.xlu0 %906, %v336_v2   ;;  %v639_v13 = vld [vmem:[%s1273_s7] sm:$0xff]  ;;  %v1189_v16 = vand.u32 127, %v461_v14  ;;  %v823_v17 = vld [vmem:[%s1267_s1 + $0xe] sm:$0x3]  ;;  %vm645_vm10 = vcmask 293888  }
  0x1c   : > { %s1045_s24 = smov 127   ;;  %s1046_s25 = smov 113   ;;  %v596_v18 = vperm.slane %v823_v17, 0  ;;  %v597_v19 = vperm.slane %v823_v17, 1  ;;  %v824_v27 = vld [vmem:[%s1267_s1 + $0x10] sm:$0x3] }
  0x1d   : > { %s834_s13 = sshll.u32 %s330_s12, 3  ;;  %s1047_s26 = smov 1   ;;  %vm590_vm2 = vcmp.lt.s32.totalorder %v1189_v16, 112  ;;  %v821_v28 = vld [vmem:[%s1267_s1 + $0xa] sm:$0x3]  ;;  %vm614_vm3 = vcmp.lt.s32.totalorder %v1189_v16, 111 }
  0x1e   : > { %s333_s19 = scalar_lea.vmem %s1266_s0, %s834_s13  ;;  %s1048_s10 = smov 16   ;;  %v620_v31 = vperm.slane %v824_v27, 0  ;;  %v621_v32 = vperm.slane %v824_v27, 1  ;;  %vm548_vm4 = vcmp.lt.s32.totalorder %v1189_v16, 127  ;;  %v554_v33 = vperm.slane %v821_v28, 0  ;;  %v397_v49 = vld [vmem:[%s1270_s4] sm:$0xff] }
  0x1f   : > { %v335_v1 = vld [vmem:[%s333_s19] sm:$0xff]  ;;  %s1049_s12 = smov 15   ;;  %s1050_s13 = smov 17   ;;  %v555_v34 = vperm.slane %v821_v28, 1  ;;  %v822_v45 = vld [vmem:[%s1267_s1 + $0xc] sm:$0x3] }
  0x20   : > { %343 = vst [vmem:[#allocation1] ss:$2 sm:$0xff] %v335_v1  ;;  %vm572_vm5 = vcmp.lt.s32.totalorder %v1189_v16, 113  ;;  %v578_v50 = vperm.slane %v822_v45, 0  ;;  %v579_v51 = vperm.slane %v822_v45, 1  ;;  %vm522_vm6 = vcmp.lt.s32.totalorder %v1189_v16, 1 }
  0x21   : > { %v820_v59 = vld [vmem:[%s1267_s1 + $0x6] sm:$0x3]  ;;  %v818_v61 = vld [vmem:[%s1267_s1 + $0x2] sm:$0x3]  ;;  %vm480_vm7 = vcmp.lt.s32.totalorder %v1189_v16, 16  ;;  %vm504_vm8 = vcmp.lt.s32.totalorder %v1189_v16, 15 }
  0x22   : > { %v528_v63 = vperm.slane %v820_v59, 0  ;;  %v529_v0 = vperm.slane %v820_v59, 1  ;;  %v398_v1 = vld [vmem:[%s1271_s5] sm:$0xff]  ;;  %v486_v2 = vperm.slane %v818_v61, 0  ;;  %vm463_vm9 = vcmp.lt.s32.totalorder %v1189_v16, 17  ;;  %s835_s18 = sshll.u32 %s1118_s9, 5 }
  0x23   : > { %s711_s21 = scalar_lea.hbm %s1274_s8, %s835_s18  ;;  %s988_s18 = scalar_lea.hbm %s1274_s8, 64 }
  0x27   : > { %v344_v4 = vld.sshfl [vmem:[#allocation1] sm:$0xff pattern:$0x75316420]  ;;  %v345_v5 = vld.sshfl [vmem:[#allocation1 + $0x8] sm:$0xff pattern:$0x75316420] }
  0x28   : > { %810 = vmatpush.msk.msra.mxu2 %vm350_vm0, %v344_v4  ;;  %812 = vmatpush.msk.msra.mxu3 %vm350_vm0, %v345_v5 }
  0x29   : > { %811 = vmatmul.msk.f32.vlgmr.msra.gmra.mxu2 %vm346_vm1, %v334_v3  ;;  %813 = vmatmul.msk.f32.vlgmr.msra.gmra.mxu3 %vm346_vm1, %v334_v3  ;;  %v487_v3 = vperm.slane %v818_v61, 1 }
  0x8d   : > { %v340_v6 = vpop.permute.xlu0 %339 }
  0xac   : > { %v372_v7 = vpop.f32.mrf.mxu2  ;;  %v392_v8 = vpop.f32.mrf.mxu3 }
  0xad   : > { %v373_v9 = vadd.f32 %v372_v7, %v340_v6  ;;  %v393_v10 = vadd.f32 %v392_v8, %v340_v6 }
  0xaf   : > { %v395_v11 = vmax.f32 %v373_v9, 0.0  ;;  %v396_v12 = vmax.f32 %v393_v10, 0.0 }
  0xb1   : > { %542 = vst [vmem:[#allocation2 + $0x48] sm:$0xf] %v395_v11  ;;  %612 = vrot.lane.b32.xlu2 %v396_v12, %s1043_s22  ;;  %588 = vrot.lane.b32.xlu1 %v396_v12, %s1044_s23 }
  0xb2   : > { %543 = vst [vmem:[#allocation2 + $0x28] sm:$0xf] %v396_v12  ;;  %816 = vmatpush.msk.msrb.mxu3 %vm350_vm0, %v396_v12  ;;  %586 = vrot.lane.b32.xlu0 %v395_v11, %s1044_s23  ;;  %s714_s23 = sshll.u32 %s711_s21, 4  ;;  %s715_s23 = int_to_ptr.hbm [resolvable:$true] %s714_s23 }
  0xb3   : > { %814 = vmatpush.msk.msrb.mxu2 %vm350_vm0, %v395_v11  ;;  %817 = vmatmul.msk.f32.vlgmr.msrb.gmra.mxu3 %vm346_vm1, %v397_v49  ;;  %s982_s9 = sshra.s32 %s715_s23, 4  ;;  %s983_s9 = int_to_ptr.hbm [resolvable:$true] %s982_s9 }
  0xb4   : > { %815 = vmatmul.msk.f32.vlgmr.msrb.gmra.mxu2 %vm346_vm1, %v397_v49  ;;  %p989_p3 = scmp.lt.s32.totalorder %s983_s9, %s1274_s8 }
  0xb9   : > { %544 = vrot.lane.b32.xlu2 %v395_v11, %s1045_s24  ;;  %610 = vrot.lane.b32.xlu1 %v395_v11, %s1043_s22 }
  0xba   : > { %546 = vrot.lane.b32.xlu0 %v396_v12, %s1045_s24 }
  0xc1   : > { %570 = vrot.lane.b32.xlu2 %v396_v12, %s1046_s25  ;;  %568 = vrot.lane.b32.xlu1 %v395_v11, %s1046_s25  ;;  %s984_s25 = scalar_lea.hbm %s983_s9, 32 }
  0xc2   : > { %518 = vrot.lane.b32.xlu0 %v395_v11, %s1047_s26  ;;  %p985_p0 = scmp.ne.s32.totalorder %s983_s9, %s984_s25  ;;  %p990_p4 = scmp.lt.s32.totalorder %s988_s18, %s984_s25 }
  0xc4   : > { %p986_p1 = pnand %p985_p0, %p1135_p5  ;;  %p991_p7 = por %p990_p4, %p989_p3 }
  0xc6   : > { %p987_p2 = pneg %p986_p1 }
  0xc8   : > { %p992_p8 = pnand %p991_p7, %p987_p2 }
  0xc9   : > { %476 = vrot.lane.b32.xlu2 %v395_v11, %s1048_s10  ;;  %520 = vrot.lane.b32.xlu1 %v396_v12, %s1047_s26 }
  0xca   : > { %478 = vrot.lane.b32.xlu0 %v396_v12, %s1048_s10 }
  0xd1   : > { %502 = vrot.lane.b32.xlu2 %v396_v12, %s1049_s12  ;;  %500 = vrot.lane.b32.xlu1 %v395_v11, %s1049_s12  ;;  %s326_s12 = sand.u32 1, %s1030_s28  }
  0xd2   : > { %457 = vrot.lane.b32.xlu0 %v395_v11, %s1050_s13  ;;  %s700_s24 = scalar_lea.sflag [#allocation5], %s326_s12 }
  0xd9   : > { %459 = vrot.lane.b32.xlu1 %v396_v12, %s1050_s13  ;;  %401 = vperm.xlu2 %907, %v398_v1   ;;  %s807_s13 = sshll.u32 %s326_s12, 5 }
  0xda   : > { %642 = vperm.xlu0 %906, %v639_v13   ;;  %s328_s17 = scalar_lea.vmem [#allocation8], %s807_s13 }
  0xdb   : > { %s712_s22 = sshll.u32 %s328_s17, 4  ;;  %s713_s22 = int_to_ptr.vmem [resolvable:$true] %s712_s22 }
 0x10b   : > { %v613_v15 = vpop.permute.xlu2 %612 }
 0x113   : > { %v545_v22 = vpop.permute.xlu2 %544 }
 0x11b   : > { %v571_v46 = vpop.permute.xlu2 %570 }
 0x123   : > { %v589_v20 = vpop.permute.xlu1 %588  ;;  %v477_v62 = vpop.permute.xlu2 %476 }
 0x124   : > { %v587_v21 = vpop.permute.xlu0 %586 }
 0x125   : > { %v591_v23 = vsel %vm590_vm2, %v587_v21, %v589_v20  ;;  %v592_v24 = vsel %vm590_vm2, %v589_v20, %v587_v21 }
 0x126   : > { %v600_v25 = vmul.f32 %v596_v18, %v591_v23  ;;  %v601_v26 = vmul.f32 %v597_v19, %v592_v24 }
 0x128   : > { %v604_v29 = vrot.slane %v600_v25, 4  ;;  %v605_v30 = vrot.slane %v601_v26, 4 }
 0x12a   : > { %608 = vst [vmem:[#allocation2 + $0x8] sm:$0xf0] %v604_v29 }
 0x12b   : > { %609 = vst [vmem:[#allocation2 + $0x20] sm:$0xf0] %v605_v30  ;;  %v611_v35 = vpop.permute.xlu1 %610  ;;  %v503_v26 = vpop.permute.xlu2 %502 }
 0x12c   : > { %v615_v36 = vsel %vm614_vm3, %v611_v35, %v613_v15  ;;  %v616_v37 = vsel %vm614_vm3, %v613_v15, %v611_v35  ;;  %v547_v38 = vpop.permute.xlu0 %546  ;;  %v819_v15 = vld [vmem:[%s1267_s1 + $0x4] sm:$0x3] }
 0x12d   : > { %v624_v39 = vmul.f32 %v620_v31, %v615_v36  ;;  %v625_v40 = vmul.f32 %v621_v32, %v616_v37  ;;  %v549_v41 = vsel %vm548_vm4, %v545_v22, %v547_v38  ;;  %v550_v42 = vsel %vm548_vm4, %v547_v38, %v545_v22  ;;  %v466_v32 = vld [vmem:[%s1267_s1] sm:$0x3] }
 0x12e   : > { %v558_v43 = vmul.f32 %v554_v33, %v549_v41  ;;  %v559_v44 = vmul.f32 %v555_v34, %v550_v42  ;;  %v510_v24 = vperm.slane %v819_v15, 0  ;;  %v511_v25 = vperm.slane %v819_v15, 1 }
 0x12f   : > { %626 = vst [vmem:[#allocation2 + $0x40] sm:$0xf] %v624_v39  ;;  %v468_v33 = vperm.slane %v466_v32, 0  ;;  %v469_v34 = vperm.slane %v466_v32, 1 }
 0x130   : > { %627 = vst [vmem:[#allocation2 + $0x38] sm:$0xf] %v625_v40  ;;  %v562_v47 = vrot.slane %v558_v43, 4  ;;  %v563_v48 = vrot.slane %v559_v44, 4  ;;  %v628_v43 = vld [vmem:[#allocation6] sm:$0xff] }
 0x132   : > { %566 = vst [vmem:[#allocation2 + $0x48] sm:$0xf0] %v562_v47 }
 0x133   : > { %567 = vst [vmem:[#allocation2 + $0x28] sm:$0xf0] %v563_v48  ;;  %v569_v52 = vpop.permute.xlu1 %568  ;;  %v402_v45 = vpop.permute.xlu2 %401 }
 0x134   : > { %v573_v53 = vsel %vm572_vm5, %v569_v52, %v571_v46  ;;  %v574_v54 = vsel %vm572_vm5, %v571_v46, %v569_v52  ;;  %v519_v55 = vpop.permute.xlu0 %518 }
 0x135   : > { %v582_v56 = vmul.f32 %v578_v50, %v573_v53  ;;  %v583_v57 = vmul.f32 %v579_v51, %v574_v54 }
 0x136   : > { %v637_v58 = vld [vmem:[#allocation2 + $0x40] sm:$0xf]  ;;  %v450_v46 = vpop.f32.mrf.mxu3 }
 0x137   : > { %584 = vst [vmem:[#allocation2 + $0x8] sm:$0xf] %v582_v56  ;;  %825 = vmatpush.msk.msra.mxu0 %vm350_vm0, %v637_v58  ;;  %v638_v60 = vld [vmem:[#allocation2 + $0x38] sm:$0xf]  ;;  %v430_v47 = vpop.f32.mrf.mxu2  ;;  %v451_v48 = vadd.f32 %v450_v46, %v402_v45 }
 0x138   : > { %585 = vst [vmem:[#allocation2 + $0x20] sm:$0xf] %v583_v57  ;;  %827 = vmatpush.msk.msra.mxu1 %vm350_vm0, %v638_v60  ;;  %v431_v49 = vadd.f32 %v430_v47, %v402_v45 }
 0x139   : > { %v633_v22 = vld [vmem:[#allocation2 + $0x48] sm:$0xff]  ;;  %v454_v50 = vmax.f32 %v451_v48, 0.0 }
 0x13a   : > { %v634_v23 = vld [vmem:[#allocation2 + $0x28] sm:$0xff]  ;;  %v453_v51 = vmax.f32 %v431_v49, 0.0 }
 0x13b   : > { %v521_v4 = vpop.permute.xlu1 %520  ;;  %456 = vst [vmem:[%s328_s17 + $0x8] sm:$0xff] %v454_v50 }
 0x13c   : > { %v523_v5 = vsel %vm522_vm6, %v519_v55, %v521_v4  ;;  %v524_v6 = vsel %vm522_vm6, %v521_v4, %v519_v55  ;;  %v479_v7 = vpop.permute.xlu0 %478  ;;  %455 = vst [vmem:[%s328_s17] sm:$0xff] %v453_v51 }
 0x13d   : > { %v532_v8 = vmul.f32 %v528_v63, %v524_v6  ;;  %v533_v9 = vmul.f32 %v529_v0, %v523_v5  ;;  %v481_v10 = vsel %vm480_vm7, %v477_v62, %v479_v7  ;;  %v482_v11 = vsel %vm480_vm7, %v479_v7, %v477_v62 }
 0x13e   : > { %v490_v12 = vmul.f32 %v486_v2, %v482_v11  ;;  %v491_v13 = vmul.f32 %v487_v3, %v481_v10  ;;  %v635_v14 = vld [vmem:[#allocation2 + $0x8] sm:$0xff] }
 0x13f   : > { %v536_v17 = vrot.slane %v532_v8, 4  ;;  %v537_v18 = vrot.slane %v533_v9, 4  ;;  %667 = vmatpush.msra.mxu0 %v635_v14  ;;  %v636_v19 = vld [vmem:[#allocation2 + $0x20] sm:$0xff] }
 0x140   : > { %v494_v20 = vrot.slane %v490_v12, 4  ;;  %v495_v21 = vrot.slane %v491_v13, 4  ;;  %687 = vmatpush.msra.mxu1 %v636_v19 }
 0x141   : > { %540 = vst [vmem:[#allocation2 + $0x18] sm:$0xf0] %v536_v17  ;;  %668 = vmatpush.msra.mxu0 %v633_v22 }
 0x142   : > { %541 = vst [vmem:[#allocation2 + $0x10] sm:$0xf0] %v537_v18  ;;  %688 = vmatpush.msra.mxu1 %v634_v23 }
 0x143   : > { %498 = vst [vmem:[#allocation2 + $0x30] sm:$0xf0] %v494_v20  ;;  %v501_v27 = vpop.permute.xlu1 %500 }
 0x144   : > { %499 = vst [vmem:[#allocation2] sm:$0xf0] %v495_v21  ;;  %v505_v28 = vsel %vm504_vm8, %v501_v27, %v503_v26  ;;  %v506_v29 = vsel %vm504_vm8, %v503_v26, %v501_v27  ;;  %v458_v35 = vpop.permute.xlu0 %457 }
 0x145   : > { %v514_v30 = vmul.f32 %v510_v24, %v506_v29  ;;  %v515_v31 = vmul.f32 %v511_v25, %v505_v28 }
 0x147   : > { %516 = vst [vmem:[#allocation2 + $0x18] sm:$0xf] %v514_v30 }
 0x148   : > { %517 = vst [vmem:[#allocation2 + $0x10] sm:$0xf] %v515_v31 }
 0x14b   : > { %v460_v36 = vpop.permute.xlu1 %459 }
 0x14c   : > { %v464_v37 = vsel %vm463_vm9, %v458_v35, %v460_v36  ;;  %v465_v38 = vsel %vm463_vm9, %v460_v36, %v458_v35  ;;  %v643_v52 = vpop.permute.xlu0 %642 }
 0x14d   : > { %v472_v39 = vmul.f32 %v468_v33, %v465_v38  ;;  %v473_v40 = vmul.f32 %v469_v34, %v464_v37 }
 0x14e   : > { %v631_v41 = vld [vmem:[#allocation2 + $0x18] sm:$0xff] }
 0x14f   : > { %474 = vst [vmem:[#allocation2 + $0x30] sm:$0xf] %v472_v39  ;;  %669 = vmatpush.msra.mxu0 %v631_v41  ;;  %v632_v42 = vld [vmem:[#allocation2 + $0x10] sm:$0xff] }
 0x150   : > { %475 = vst [vmem:[#allocation2] sm:$0xf] %v473_v40  ;;  %689 = vmatpush.msra.mxu1 %v632_v42 }
 0x156   : > { %v629_v44 = vld [vmem:[#allocation2 + $0x30] sm:$0xff] }
 0x157   : > { %670 = vmatpush.msra.mxu0 %v629_v44  ;;  %v630_v16 = vld [vmem:[#allocation2] sm:$0xff] }
 0x158   : > { %690 = vmatpush.msra.mxu1 %v630_v16  ;;  %826 = vmatmul.msk.f32.vlgmr.msra.gmra.mxu0 %vm645_vm10, %v628_v43 }
 0x159   : > { %828 = vmatmul.msk.f32.vlgmr.msra.gmra.mxu1 %vm645_vm10, %v628_v43 }
 0x1d5   : > { %v672_v53 = vpop.f32.mrf.mxu0 }
 0x1d6   : > { %v673_v54 = vadd.f32 %v672_v53, %v643_v52  ;;  %v692_v55 = vpop.f32.mrf.mxu1 }
 0x1d7   : > { %v693_v56 = vadd.f32 %v692_v55, %v643_v52 }
 0x1d8   : > { %v695_v57 = vmax.f32 %v673_v54, 0.0 }
 0x1d9   : > { %v696_v58 = vmax.f32 %v693_v56, 0.0 }
 0x1da   : > { %697 = vst [vmem:[%s328_s17 + $0x10] sm:$0xff] %v695_v57 }
 0x1db   : > { %698 = vst [vmem:[%s328_s17 + $0x18] sm:$0xff] %v696_v58 }
 0x1dc   : > { %995 = shalt.err (!%p992_p8)
}
 0x1dd   : > { %s1051_s12 = smov 256  }
 0x1de   : > { %844 = dma.vmem_to_hbm [thread:$0]  (%p1135_p5), %s713_s22, 512, %s715_s23, %s700_s24, %s1051_s12, %s1051_s12, %s1048_s10  }
 0x1df PF: > { %p861_p9 = scmp.ge.s32.totalorder %s1038_s30, 2  ;;  %s729_s17 = sand.u32 1, %s1026_s27  }
 0x1e0   : > { %s730_s21 = scalar_lea.sflag [#allocation5], %s729_s17 }
 0x1e1   : > { %p854_p10 = pnand %p861_p9, %p1139_p6 }
 0x1e3   : > { %p855_p11 = pneg %p854_p10 }
 0x1e5   : > { %1021 = dma.done.wait (%p855_p11), %s730_s21, 512  }
 0x1e6   : > { %1023 = vsyncadd (%p855_p11), %s730_s21, 4294966784  ;;  %p20_p12 = scmp.ge.s32.totalorder %s1122_s11, 4   ;;  %s1278_s27 = smov %s1030_s28 }
 0x1e7   : > { %s1279_s28 = smov %s1034_s29  ;;  %s1280_s29 = smov %s1133_s14 }
 0x1e8   : > { %s1281_s30 = smov %s1122_s11  ;;  %22 = sbr.rel (!%p20_p12) target bundleno = 5 (0x5), region = 103 }
 0x1ed   :  { %736 = vsyncpa [#allocation4], 1 }
 0x1ee   :  { %738 = vsyncpa [#allocation4 + $0x1], 1 }
 0x1ef   :  { %739 = vsyncpa [#allocation7], 1 }
 0x1f0   :  { %740 = vsyncpa [#allocation5], 1 }
 0x1f1   :  { %742 = vsyncpa [#allocation5 + $0x1], 1 }

</bundles_post_ra>
